<compile_context>
chip_gen: v7x
topology: tpu7x:2x2x1
jax: 0.10.0
libtpu: 0.0.40
codegen_flags: <defaults>
</compile_context>

<pallas_src>
import functools

import jax
import jax.numpy as jnp
from jax.experimental import pallas as pl
from jax.experimental.pallas import tpu as pltpu

_LANE = 128
_SUBLANE = 8


def _round_up(x, m):
    return ((x + m - 1) // m) * m


def _fused_mlp_kernel(x_ref, *refs, num_layers: int):
    """refs = (w0, b0, w1, b1, ..., w_{L-1}, b_{L-1}, o_ref)."""
    o_ref = refs[-1]
    param_refs = refs[:-1]

    h = x_ref[...].astype(jnp.float32)
    for i in range(num_layers):
        w = param_refs[2 * i][...]
        b = param_refs[2 * i + 1][...]
        h = jnp.dot(
            h,
            w,
            preferred_element_type=jnp.float32,
            precision=jax.lax.Precision.HIGHEST,
        ) + b.astype(jnp.float32)
        if i < num_layers - 1:
            h = jnp.tanh(h)  # EUP slot; stays in f32
    o_ref[...] = h.astype(o_ref.dtype)


def _pad_params_for_lanes(params):
    """Zero-pad hidden widths to a multiple of 128 so intermediates are
    full-lane; input width (K0) and final output width stay at true size so the
    HBM-facing streams (x, out) carry no padded bytes."""
    num_layers = len(params)
    padded = []
    prev_out_p = params[0][0].shape[0]  # K0, kept unpadded
    for i, (w, b) in enumerate(params):
        k_in, k_out = w.shape
        k_in_p = prev_out_p
        k_out_p = _round_up(k_out, _LANE) if i < num_layers - 1 else k_out
        w_p = jnp.zeros((k_in_p, k_out_p), w.dtype).at[:k_in, :k_out].set(w)
        b_p = jnp.zeros((1, k_out_p), b.dtype).at[:, :k_out].set(b)
        padded.append((w_p, b_p))
        prev_out_p = k_out_p
    return padded


def dnn_forward(params, x, *, tm_max: int = 2048):
    """Fused forward: (Linear -> Tanh) * (depth-1), then final Linear."""
    M, K0 = x.shape
    num_layers = len(params)
    N_out = params[-1][0].shape[1]
    itemsize = jnp.dtype(x.dtype).itemsize

    padded_params = _pad_params_for_lanes(params)

    # --- batch tiling: sublane-align the rows; cap the tile so large batches
    #     produce >= 2 grid steps (lets v7x's two TCs split the parallel axis).
    M_pad = _round_up(M, _SUBLANE)
    half = _round_up((M_pad + 1) // 2, _SUBLANE)
    tm = max(_SUBLANE, min(tm_max, half))
    M_pad = _round_up(M_pad, tm)
    x_p = x if M_pad == M else jnp.pad(x, ((0, M_pad - M), (0, 0)))

    # --- BlockSpecs: x/out tiled over the batch grid; weights/biases resident
    #     (constant index_map -> DMA'd once, reused every grid step).
    in_specs = [pl.BlockSpec((tm, K0), lambda i: (i, 0))]
    flat_params = []
    for (w, b) in padded_params:
        k_in, k_out = w.shape
        in_specs.append(pl.BlockSpec((k_in, k_out), lambda i: (0, 0)))
        in_specs.append(pl.BlockSpec((1, k_out), lambda i: (0, 0)))
        flat_params.extend((w, b))

    # True-width output block: last dim == full array dim (legal), so the HBM
    # write stream carries only real output bytes (no 128-lane padding).
    out_spec = pl.BlockSpec((tm, N_out), lambda i: (i, 0))

    flops = 2 * M_pad * sum(w.shape[0] * w.shape[1] for (w, _) in padded_params)
    transcendentals = M_pad * sum(w.shape[1] for (w, _) in padded_params[:-1])
    bytes_accessed = (
        x_p.size * itemsize
        + M_pad * N_out * itemsize
        + sum((w.size + b.size) for (w, b) in padded_params) * itemsize
    )
    cost = pl.CostEstimate(
        flops=flops, transcendentals=transcendentals, bytes_accessed=bytes_accessed
    )

    kernel = functools.partial(_fused_mlp_kernel, num_layers=num_layers)

    out_padded = pl.pallas_call(
        kernel,
        out_shape=jax.ShapeDtypeStruct((M_pad, N_out), x.dtype),
        grid=(M_pad // tm,),
        in_specs=in_specs,
        out_specs=out_spec,
        compiler_params=pltpu.CompilerParams(
            dimension_semantics=("parallel",),  # batch tiles are independent
        ),
        cost_estimate=cost,
    )(x_p, *flat_params)

    return out_padded if M_pad == M else out_padded[:M]


def init_dnn_params(key, layers):
    """Deterministic init mimicking PyTorch nn.Linear's uniform(-1/sqrt(fan_in), ...)."""
    params = []
    for i in range(len(layers) - 1):
        fan_in, fan_out = layers[i], layers[i + 1]
        key, kw, kb = jax.random.split(key, 3)
        bound = 1.0 / jnp.sqrt(fan_in)
        # Stored as (in, out) = transpose of PyTorch's (out, in) weight.
        w = jax.random.uniform(kw, (fan_in, fan_out), jnp.float32, -bound, bound)
        b = jax.random.uniform(kb, (1, fan_out), jnp.float32, -bound, bound)
        params.append((w, b))
    return params


def dnn_forward_ref(params, x):
    """Plain-JAX reference (full-precision matmuls) for correctness checking."""
    depth = len(params)
    out = x
    for i, (w, b) in enumerate(params):
        out = jnp.dot(out, w, precision=jax.lax.Precision.HIGHEST) + b
        if i < depth - 1:
            out = jnp.tanh(out)
    return out


if __name__ == "__main__":
    # DNN(layers=[16, 32, 32, 8]): 3 Linear layers, tanh after the first two.
    layers = [16, 32, 32, 8]
    batch = 8

    key = jax.random.PRNGKey(0)
    key, kx = jax.random.split(key)
    x = jax.random.normal(kx, (batch, layers[0]), jnp.float32)

    params = init_dnn_params(key, layers)

    fwd = jax.jit(dnn_forward)
    out = fwd(params, x)
    out = jax.block_until_ready(out)

    ref = dnn_forward_ref(params, x)
    assert out.shape == (batch, layers[-1])
    assert jnp.allclose(out, ref, atol=1e-5, rtol=1e-4), "mismatch vs reference"

    print("KERNEL_OK")
</pallas_src>

<mosaic_0001>
module attributes {stable_mosaic.version = 11 : i64} {
  func.func @_fused_mlp_kernel(%arg0: i32, %arg1: memref<8x16xf32, #tpu.memory_space<vmem>>, %arg2: memref<16x128xf32, #tpu.memory_space<vmem>>, %arg3: memref<1x128xf32, #tpu.memory_space<vmem>>, %arg4: memref<128x128xf32, #tpu.memory_space<vmem>>, %arg5: memref<1x128xf32, #tpu.memory_space<vmem>>, %arg6: memref<128x8xf32, #tpu.memory_space<vmem>>, %arg7: memref<1x8xf32, #tpu.memory_space<vmem>>, %arg8: memref<8x8xf32, #tpu.memory_space<vmem>>) attributes {dimension_semantics = [#tpu.dimension_semantics<parallel>], iteration_bounds = array<i64: 1>, scalar_prefetch = 0 : i64, scratch_operands = 0 : i64, tpu.core_type = #tpu.core_type<tc>, window_params = [{transform_indices = @transform_0, window_bounds = array<i64: 8, 16>}, {pipeline_mode = #tpu.pipeline_mode<synchronous>, transform_indices = @transform_1, window_bounds = array<i64: 16, 128>}, {pipeline_mode = #tpu.pipeline_mode<synchronous>, transform_indices = @transform_2, window_bounds = array<i64: 1, 128>}, {pipeline_mode = #tpu.pipeline_mode<synchronous>, transform_indices = @transform_3, window_bounds = array<i64: 128, 128>}, {pipeline_mode = #tpu.pipeline_mode<synchronous>, transform_indices = @transform_4, window_bounds = array<i64: 1, 128>}, {pipeline_mode = #tpu.pipeline_mode<synchronous>, transform_indices = @transform_5, window_bounds = array<i64: 128, 8>}, {pipeline_mode = #tpu.pipeline_mode<synchronous>, transform_indices = @transform_6, window_bounds = array<i64: 1, 8>}, {transform_indices = @transform_7, window_bounds = array<i64: 8, 8>}]} {
    %c0 = arith.constant 0 : index
    %c0_0 = arith.constant 0 : index
    %0 = vector.load %arg1[%c0, %c0_0] : memref<8x16xf32, #tpu.memory_space<vmem>>, vector<8x16xf32>
    %c0_1 = arith.constant 0 : index
    %c0_2 = arith.constant 0 : index
    %1 = vector.load %arg2[%c0_1, %c0_2] : memref<16x128xf32, #tpu.memory_space<vmem>>, vector<16x128xf32>
    %c0_3 = arith.constant 0 : index
    %c0_4 = arith.constant 0 : index
    %2 = vector.load %arg3[%c0_3, %c0_4] : memref<1x128xf32, #tpu.memory_space<vmem>>, vector<1x128xf32>
    %cst = arith.constant dense<0.000000e+00> : vector<8x128xf32>
    %3 = tpu.matmul %0, %1, %cst {dimension_numbers = #tpu.dot_dimension_numbers<[1], [0], [0], [1], [0, 0, 1, 1], [], []>, precision = #tpu.contract_precision<fp32>} : vector<8x16xf32>, vector<16x128xf32>, vector<8x128xf32> -> vector<8x128xf32>
    %4 = vector.broadcast %2 : vector<1x128xf32> to vector<8x128xf32>
    %5 = arith.addf %3, %4 : vector<8x128xf32>
    %6 = math.tanh %5 : vector<8x128xf32>
    %c0_5 = arith.constant 0 : index
    %c0_6 = arith.constant 0 : index
    %7 = vector.load %arg4[%c0_5, %c0_6] : memref<128x128xf32, #tpu.memory_space<vmem>>, vector<128x128xf32>
    %c0_7 = arith.constant 0 : index
    %c0_8 = arith.constant 0 : index
    %8 = vector.load %arg5[%c0_7, %c0_8] : memref<1x128xf32, #tpu.memory_space<vmem>>, vector<1x128xf32>
    %cst_9 = arith.constant dense<0.000000e+00> : vector<8x128xf32>
    %9 = tpu.matmul %6, %7, %cst_9 {dimension_numbers = #tpu.dot_dimension_numbers<[1], [0], [0], [1], [0, 0, 1, 1], [], []>, precision = #tpu.contract_precision<fp32>} : vector<8x128xf32>, vector<128x128xf32>, vector<8x128xf32> -> vector<8x128xf32>
    %10 = vector.broadcast %8 : vector<1x128xf32> to vector<8x128xf32>
    %11 = arith.addf %9, %10 : vector<8x128xf32>
    %12 = math.tanh %11 : vector<8x128xf32>
    %c0_10 = arith.constant 0 : index
    %c0_11 = arith.constant 0 : index
    %13 = vector.load %arg6[%c0_10, %c0_11] : memref<128x8xf32, #tpu.memory_space<vmem>>, vector<128x8xf32>
    %c0_12 = arith.constant 0 : index
    %c0_13 = arith.constant 0 : index
    %14 = vector.load %arg7[%c0_12, %c0_13] : memref<1x8xf32, #tpu.memory_space<vmem>>, vector<1x8xf32>
    %cst_14 = arith.constant dense<0.000000e+00> : vector<8x8xf32>
    %15 = tpu.matmul %12, %13, %cst_14 {dimension_numbers = #tpu.dot_dimension_numbers<[1], [0], [0], [1], [0, 0, 1, 1], [], []>, precision = #tpu.contract_precision<fp32>} : vector<8x128xf32>, vector<128x8xf32>, vector<8x8xf32> -> vector<8x8xf32>
    %16 = vector.broadcast %14 : vector<1x8xf32> to vector<8x8xf32>
    %17 = arith.addf %15, %16 : vector<8x8xf32>
    %c0_15 = arith.constant 0 : index
    %c0_16 = arith.constant 0 : index
    %18 = vector.load %arg8[%c0_15, %c0_16] : memref<8x8xf32, #tpu.memory_space<vmem>>, vector<8x8xf32>
    tpu.vector_store %arg8[%c0_15, %c0_16], %17 {strides = array<i32>} : memref<8x8xf32, #tpu.memory_space<vmem>>, vector<8x8xf32>,
    return
  }
  func.func @transform_0(%arg0: i32) -> (i32, i32) {
    %c0_i32 = arith.constant 0 : i32
    %c0_i32_0 = arith.constant 0 : i32
    return %arg0, %c0_i32 : i32, i32
  }
  func.func @transform_1(%arg0: i32) -> (i32, i32) {
    %c0_i32 = arith.constant 0 : i32
    %c0_i32_0 = arith.constant 0 : i32
    %c0_i32_1 = arith.constant 0 : i32
    return %c0_i32, %c0_i32_0 : i32, i32
  }
  func.func @transform_2(%arg0: i32) -> (i32, i32) {
    %c0_i32 = arith.constant 0 : i32
    %c0_i32_0 = arith.constant 0 : i32
    %c0_i32_1 = arith.constant 0 : i32
    return %c0_i32, %c0_i32_0 : i32, i32
  }
  func.func @transform_3(%arg0: i32) -> (i32, i32) {
    %c0_i32 = arith.constant 0 : i32
    %c0_i32_0 = arith.constant 0 : i32
    %c0_i32_1 = arith.constant 0 : i32
    return %c0_i32, %c0_i32_0 : i32, i32
  }
  func.func @transform_4(%arg0: i32) -> (i32, i32) {
    %c0_i32 = arith.constant 0 : i32
    %c0_i32_0 = arith.constant 0 : i32
    %c0_i32_1 = arith.constant 0 : i32
    return %c0_i32, %c0_i32_0 : i32, i32
  }
  func.func @transform_5(%arg0: i32) -> (i32, i32) {
    %c0_i32 = arith.constant 0 : i32
    %c0_i32_0 = arith.constant 0 : i32
    %c0_i32_1 = arith.constant 0 : i32
    return %c0_i32, %c0_i32_0 : i32, i32
  }
  func.func @transform_6(%arg0: i32) -> (i32, i32) {
    %c0_i32 = arith.constant 0 : i32
    %c0_i32_0 = arith.constant 0 : i32
    %c0_i32_1 = arith.constant 0 : i32
    return %c0_i32, %c0_i32_0 : i32, i32
  }
  func.func @transform_7(%arg0: i32) -> (i32, i32) {
    %c0_i32 = arith.constant 0 : i32
    %c0_i32_0 = arith.constant 0 : i32
    return %arg0, %c0_i32 : i32, i32
  }
}

</mosaic_0001>

<bundles_post_ra>
// kernel: dnn_forward.1
= control target key start
LH: loop header
LB: loop body
LE: loop exit
PB: predicated region body
PF: predicated region fallthrough
CT: control target
= control target key end

     0   :  { %v2903_v3 = vmov 0.0|0.0   ;;  %vm2904_vm0 = vmmov 0   ;;  %v2905_v6 = vmov 0.0   ;;  %vm37_vm1 = vcmask 130048   ;;  %s3624_s0 = inlined_call_operand.vmem [shape: f32[8,16], index: 0, kind: input, shape index: {}]   ;;  %s3625_s1 = inlined_call_operand.vmem [shape: f32[16,128], index: 1, kind: input, shape index: {}]   ;;  %s3626_s2 = inlined_call_operand.vmem [shape: f32[1,128], index: 2, kind: input, shape index: {}]   ;;  %s3627_s3 = inlined_call_operand.vmem [shape: f32[128,128], index: 3, kind: input, shape index: {}]   ;;  %s3628_s4 = inlined_call_operand.vmem [shape: f32[1,128], index: 4, kind: input, shape index: {}]   ;;  %s3629_s5 = inlined_call_operand.vmem [shape: f32[128,8], index: 5, kind: input, shape index: {}]   ;;  %s3630_s6 = inlined_call_operand.vmem [shape: f32[1,8], index: 6, kind: input, shape index: {}]   ;;  %s3631_s7 = inlined_call_operand.hbm [shape: f32[8,8], index: 7, kind: output, shape index: {}]  }
   0x1   :  { %v28_v0 = vld [vmem:[%s3625_s1] sm:$0xff]  ;;  %v29_v1 = vld [vmem:[%s3625_s1 + $0x8] sm:$0xff]  ;;  %2542 = vmatprep.subr.bf16.mxu0 %v2903_v3  ;;  %2096 = vmatprep.mubr.msk.f32.mxu0 %vm2904_vm0, %v2905_v6 }
   0x2   :  { %v27_v2 = vld [vmem:[%s3624_s0] sm:$0xff]  ;;  %v42_v4 = vand.u32 4294901760, %v28_v0  ;;  %v45_v5 = vand.u32 4294901760, %v29_v1  ;;  %v502_v8 = vld [vmem:[%s3627_s3 + $0x8] sm:$0xff]  ;;  %2533 = vmatprep.subr.bf16.mxu1 %v2903_v3  ;;  %2075 = vmatprep.mubr.msk.f32.mxu1 %vm2904_vm0, %v2905_v6 }
   0x3   :  { %v501_v7 = vld [vmem:[%s3627_s3] sm:$0xff]  ;;  %v39_v9 = vsel %vm37_vm1, %v27_v2, 0  ;;  %v528_v11 = vand.u32 4294901760, %v502_v8 }
   0x4   :  { %v525_v10 = vand.u32 4294901760, %v501_v7 }
   0x5   :  { %12 = vsyncpa [#allocation3], 0  ;;  %v2534_v12 = vpack.c.bf16 %v45_v5, %v42_v4  ;;  %v120_v13 = vsub.f32 %v28_v0, %v42_v4  ;;  %v127_v14 = vsub.f32 %v29_v1, %v45_v5  ;;  %v108_v15 = vand.u32 4294901760, %v39_v9  ;;  %v503_v32 = vld [vmem:[%s3627_s3 + $0x10] sm:$0xff]  ;;  %v504_v33 = vld [vmem:[%s3627_s3 + $0x18] sm:$0xff]  ;;  %s2906_s19 = smov [#allocation2]  }
   0x6   :  { %v2968_v16 = vsub.f32 %v501_v7, %v525_v10  ;;  %v2970_v17 = vsub.f32 %v502_v8, %v528_v11  ;;  %v2986_v31 = vpack.c.bf16 %v528_v11, %v525_v10  ;;  %v531_v34 = vand.u32 4294901760, %v503_v32  ;;  %v505_v39 = vld [vmem:[%s3627_s3 + $0x20] sm:$0xff]  ;;  %v506_v40 = vld [vmem:[%s3627_s3 + $0x28] sm:$0xff]  ;;  %v507_v44 = vld [vmem:[%s3627_s3 + $0x30] sm:$0xff]  ;;  %s1838_s20 = sshll.u32 %s2906_s19, 4  ;;  %s1839_s20 = int_to_ptr.vmem [resolvable:$true] %s1838_s20 }
   0x7   :  { %2544 = vmatpush3.bf16.msra.mxu0 %v2534_v12  ;;  %v109_v18 = vsub.f32 %v39_v9, %v108_v15  ;;  %2535 = vmatpush3.bf16.msra.mxu1 %v2534_v12  ;;  %v121_v19 = vand.u32 4294901760, %v120_v13  ;;  %v128_v20 = vand.u32 4294901760, %v127_v14  ;;  %v2540_v30 = vpack.c.bf16 %v127_v14, %v120_v13  ;;  %v508_v45 = vld [vmem:[%s3627_s3 + $0x38] sm:$0xff]  ;;  %v509_v49 = vld [vmem:[%s3627_s3 + $0x40] sm:$0xff]  ;;  %v510_v50 = vld [vmem:[%s3627_s3 + $0x48] sm:$0xff]  ;;  %s2879_s21 = scalar_lea.vmem %s1839_s20, 128  ;;  %p2884_p1 = scmp.lt.s32.totalorder %s1839_s20, %s1839_s20 }
   0x8   :  { %2536 = vmatprep.subr.bf16.mxu1 %v2903_v3  ;;  %2545 = vmatprep.subr.bf16.mxu0 %v2903_v3  ;;  %v534_v35 = vand.u32 4294901760, %v504_v33  ;;  %v3002_v37 = vsub.f32 %v503_v32, %v531_v34  ;;  %v537_v41 = vand.u32 4294901760, %v505_v39  ;;  %v540_v42 = vand.u32 4294901760, %v506_v40  ;;  %v511_v54 = vld [vmem:[%s3627_s3 + $0x50] sm:$0xff]  ;;  %v512_v55 = vld [vmem:[%s3627_s3 + $0x58] sm:$0xff]  ;;  %v513_v59 = vld [vmem:[%s3627_s3 + $0x60] sm:$0xff]  ;;  %p2880_p0 = scmp.ne.s32.totalorder %s1839_s20, %s2879_s21  ;;  %p2885_p2 = scmp.lt.s32.totalorder %s2879_s21, %s2879_s21 }
   0x9   :  { %v110_v21 = vand.u32 4294901760, %v109_v18  ;;  %v122_v22 = vsub.f32 %v120_v13, %v121_v19  ;;  %v129_v23 = vsub.f32 %v127_v14, %v128_v20  ;;  %v2546_v24 = vpack.c.bf16 %v128_v20, %v121_v19  ;;  %v514_v60 = vld [vmem:[%s3627_s3 + $0x68] sm:$0xff]  ;;  %v515_v4 = vld [vmem:[%s3627_s3 + $0x70] sm:$0xff]  ;;  %v516_v5 = vld [vmem:[%s3627_s3 + $0x78] sm:$0xff] }
   0xa   :  { %v3000_v36 = vpack.c.bf16 %v534_v35, %v531_v34  ;;  %v3004_v38 = vsub.f32 %v504_v33, %v534_v35  ;;  %v3014_v43 = vpack.c.bf16 %v540_v42, %v537_v41  ;;  %v543_v46 = vand.u32 4294901760, %v507_v44  ;;  %p2886_p3 = por %p2885_p2, %p2884_p1 }
   0xb   :  { %2097 = vmatmul.mubr.f32.vlgmr.msra.gmra.mrb[0].mxu0 %v110_v21  ;;  %v111_v25 = vsub.f32 %v109_v18, %v110_v21  ;;  %v123_v26 = vand.u32 4294901760, %v122_v22  ;;  %v130_v27 = vand.u32 4294901760, %v129_v23  ;;  %v546_v47 = vand.u32 4294901760, %v508_v45 }
   0xc   :  { %2547 = vmatpush3.bf16.msra.mxu0 %v2546_v24  ;;  %2103 = vmatprep.mubr.msk.f32.mxu0 %vm2904_vm0, %v2905_v6  ;;  %v549_v51 = vand.u32 4294901760, %v509_v49  ;;  %v552_v52 = vand.u32 4294901760, %v510_v50  ;;  %v555_v56 = vand.u32 4294901760, %v511_v54  ;;  %v558_v57 = vand.u32 4294901760, %v512_v55  ;;  %p2887_p4 = pnand %p2886_p3, %p2880_p0 }
   0xd   :  { %v112_v28 = vand.u32 4294901760, %v111_v25  ;;  %v2537_v29 = vpack.c.bf16 %v130_v27, %v123_v26  ;;  %2548 = vmatprep.subr.bf16.mxu0 %v2903_v3  ;;  %v3024_v48 = vpack.c.bf16 %v546_v47, %v543_v46  ;;  %v561_v61 = vand.u32 4294901760, %v513_v59 }
   0xe   :  { %v3034_v53 = vpack.c.bf16 %v552_v52, %v549_v51  ;;  %v3044_v58 = vpack.c.bf16 %v558_v57, %v555_v56  ;;  %v564_v62 = vand.u32 4294901760, %v514_v60  ;;  %v3054_v63 = vsub.f32 %v505_v39, %v537_v41 }
   0xf   :  { %2076 = vmatmul.mubr.f32.vlgmr.msra.gmra.mrb[0].mxu1 %v112_v28  ;;  %v3056_v0 = vsub.f32 %v506_v40, %v540_v42  ;;  %v3058_v1 = vsub.f32 %v507_v44, %v543_v46  ;;  %v3060_v2 = vsub.f32 %v508_v45, %v546_v47  ;;  %v3068_v7 = vsub.f32 %v509_v49, %v549_v51 }
  0x10   :  { %2538 = vmatpush3.bf16.msra.mxu1 %v2537_v29  ;;  %2082 = vmatprep.mubr.msk.f32.mxu1 %vm2904_vm0, %v2905_v6  ;;  %v3070_v8 = vsub.f32 %v510_v50, %v552_v52  ;;  %v3072_v9 = vsub.f32 %v511_v54, %v555_v56  ;;  %v3074_v10 = vsub.f32 %v512_v55, %v558_v57  ;;  %v567_v14 = vand.u32 4294901760, %v515_v4 }
  0x11   :  { %2539 = vmatprep.subr.bf16.mxu1 %v2903_v3  ;;  %v3076_v11 = vpack.c.bf16 %v564_v62, %v561_v61  ;;  %v3080_v13 = vsub.f32 %v514_v60, %v564_v62  ;;  %v625_v19 = vand.u32 4294901760, %v2970_v17  ;;  %v632_v27 = vand.u32 4294901760, %v3002_v37 }
  0x12   :  { %v3085_v20 = vsub.f32 %v515_v4, %v567_v14  ;;  %v639_v28 = vand.u32 4294901760, %v3004_v38  ;;  %v646_v35 = vand.u32 4294901760, %v3054_v63  ;;  %v653_v39 = vand.u32 4294901760, %v3056_v0 }
  0x13   :  { %2104 = vmatmul.mubr.f32.vlgmr.msra.gmra.mrb[0].mxu0 %v108_v15  ;;  %v626_v24 = vsub.f32 %v2970_v17, %v625_v19  ;;  %v660_v46 = vand.u32 4294901760, %v3058_v1  ;;  %v667_v47 = vand.u32 4294901760, %v3060_v2  ;;  %v674_v55 = vand.u32 4294901760, %v3068_v7 }
  0x14   :  { %2550 = vmatpush3.bf16.msra.mxu0 %v2534_v12  ;;  %2110 = vmatprep.mubr.msk.f32.mxu0 %vm2904_vm0, %v2905_v6  ;;  %v3078_v12 = vsub.f32 %v513_v59, %v561_v61  ;;  %v640_v32 = vsub.f32 %v3004_v38, %v639_v28  ;;  %v647_v41 = vsub.f32 %v3054_v63, %v646_v35  ;;  %v681_v56 = vand.u32 4294901760, %v3070_v8 }
  0x15   :  { %2695 = vmatprep.subr.bf16.mxu0 %v2903_v3  ;;  %v627_v26 = vand.u32 4294901760, %v626_v24  ;;  %v654_v42 = vsub.f32 %v3056_v0, %v653_v39  ;;  %v661_v50 = vsub.f32 %v3058_v1, %v660_v46  ;;  %v668_v51 = vsub.f32 %v3060_v2, %v667_v47 }
  0x16   :  { %v641_v34 = vand.u32 4294901760, %v640_v32  ;;  %v648_v44 = vand.u32 4294901760, %v647_v41  ;;  %v675_v59 = vsub.f32 %v3068_v7, %v674_v55  ;;  %v682_v60 = vsub.f32 %v3070_v8, %v681_v56 }
  0x17   :  { %2083 = vmatmul.mubr.f32.vlgmr.msra.gmra.mrb[0].mxu1 %v108_v15  ;;  %v655_v45 = vand.u32 4294901760, %v654_v42  ;;  %v662_v52 = vand.u32 4294901760, %v661_v50  ;;  %v669_v54 = vand.u32 4294901760, %v668_v51  ;;  %v3637_v4 = vand.u32 4294901760, %v3072_v9 }
  0x18   :  { %2541 = vmatpush3.bf16.msra.mxu1 %v2540_v30  ;;  %2089 = vmatprep.mubr.msk.f32.mxu1 %vm2904_vm0, %v2905_v6  ;;  %v633_v30 = vsub.f32 %v3002_v37, %v632_v27  ;;  %v676_v61 = vand.u32 4294901760, %v675_v59  ;;  %v683_v62 = vand.u32 4294901760, %v682_v60  ;;  %vm1830_vm2 = vcmask 64512  }
  0x19   :  { %2551 = vmatprep.subr.bf16.mxu1 %v2903_v3  ;;  %v2582_v49 = vpack.c.bf16 %v655_v45, %v648_v44  ;;  %v2585_v57 = vpack.c.bf16 %v669_v54, %v662_v52  ;;  %v3633_v44 = vand.u32 4294901760, %v3085_v20 }
  0x1a   :  { %v634_v33 = vand.u32 4294901760, %v633_v30  ;;  %v3634_v30 = vand.u32 4294901760, %v3080_v13 }
  0x1b   :  { %2111 = vmatmul.mubr.f32.vlgmr.msra.gmra.mrb[0].mxu0 %v108_v15  ;;  %v570_v15 = vand.u32 4294901760, %v516_v5  ;;  %v717_v51 = vsub.f32 %v3085_v20, %v3633_v44 }
  0x1c   :  { %2355 = vmatprep.mubr.msk.f32.mxu0 %vm2904_vm0, %v2905_v6  ;;  %v3112_v40 = vpack.c.bf16 %v641_v34, %v634_v33  ;;  %v710_v34 = vsub.f32 %v3080_v13, %v3634_v30 }
  0x1d   :  { %v3088_v21 = vpack.c.bf16 %v570_v15, %v567_v14  ;;  %v3090_v22 = vsub.f32 %v516_v5, %v570_v15  ;;  %v3636_v5 = vand.u32 4294901760, %v3074_v10  ;;  %v2588_v14 = vpack.c.bf16 %v683_v62, %v676_v61 }
  0x1e   :  { %v689_v15 = vsub.f32 %v3072_v9, %v3637_v4  ;;  %v711_v42 = vand.u32 4294901760, %v710_v34  ;;  %v718_v54 = vand.u32 4294901760, %v717_v51  ;;  %v2600_v61 = vpack.c.bf16 %v2970_v17, %v2968_v16  ;;  %v1846_v51 = vld [vmem:[%s3626_s2] ss:$0 sm:$0xff] }
  0x1f   :  { %2090 = vmatmul.mubr.f32.vlgmr.msra.gmra.mrb[0].mxu1 %v109_v18  ;;  %v618_v18 = vand.u32 4294901760, %v2968_v16  ;;  %v3632_v45 = vand.u32 4294901760, %v3090_v22  ;;  %v2603_v62 = vpack.c.bf16 %v3004_v38, %v3002_v37  ;;  %v2621_v34 = vpack.c.bf16 %v3090_v22, %v3085_v20 }
  0x20   :  { %2553 = vmatpush3.bf16.msra.mxu1 %v2986_v31  ;;  %2145 = vmatprep.mubr.msk.f32.mxu1 %vm2904_vm0, %v2905_v6  ;;  %v690_v24 = vand.u32 4294901760, %v689_v15  ;;  %v2606_v15 = vpack.c.bf16 %v3056_v0, %v3054_v63  ;;  %v2657_v17 = vpack.c.bf16 %v667_v47, %v660_v46  ;;  %v2660_v37 = vpack.c.bf16 %v681_v56, %v674_v55  ;;  %v1178_v55 = vld [vmem:[%s3629_s5 + $0x60] sm:$0xff]  ;;  %v1179_v56 = vld [vmem:[%s3629_s5 + $0x68] sm:$0xff] }
  0x21   :  { %2554 = vmatprep.subr.bf16.mxu1 %v2903_v3  ;;  %v619_v23 = vsub.f32 %v2968_v16, %v618_v18  ;;  %v724_v52 = vsub.f32 %v3090_v22, %v3632_v45  ;;  %v2654_v16 = vpack.c.bf16 %v653_v39, %v646_v35  ;;  %v3642_v38 = vand.u32 4294901760, %v3072_v9  ;;  %v1177_v35 = vld [vmem:[%s3629_s5 + $0x58] sm:$0xff] }
  0x22   :  { %v3643_v63 = vand.u32 4294901760, %v3074_v10  ;;  %v1223_v46 = vand.u32 4294901760, %v1177_v35 }
  0x23   :  { %v620_v25 = vand.u32 4294901760, %v619_v23  ;;  %v696_v23 = vsub.f32 %v3074_v10, %v3636_v5  ;;  %v725_v59 = vand.u32 4294901760, %v724_v52 }
  0x24   :  { %2556 = vmatpush3.bf16.msra.mxu1 %v3000_v36  ;;  %v2663_v0 = vpack.c.bf16 %v3643_v63, %v3642_v38 }
  0x25   :  { %2557 = vmatprep.subr.bf16.mxu1 %v2903_v3  ;;  %v3102_v29 = vpack.c.bf16 %v627_v26, %v620_v25  ;;  %v697_v25 = vand.u32 4294901760, %v696_v23  ;;  %v3635_v26 = vand.u32 4294901760, %v3078_v12  ;;  %v2597_v60 = vpack.c.bf16 %v725_v59, %v718_v54 }
  0x26   :  { %v2609_v23 = vpack.c.bf16 %v3060_v2, %v3058_v1  ;;  %v3644_v1 = vand.u32 4294901760, %v3078_v12  ;;  %v3645_v2 = vand.u32 4294901760, %v3080_v13 }
  0x27   :  { %v2591_v32 = vpack.c.bf16 %v697_v25, %v690_v24  ;;  %v703_v33 = vsub.f32 %v3078_v12, %v3635_v26  ;;  %v2612_v24 = vpack.c.bf16 %v3070_v8, %v3068_v7  ;;  %v2615_v25 = vpack.c.bf16 %v3074_v10, %v3072_v9  ;;  %v1173_v9 = vld [vmem:[%s3629_s5 + $0x38] sm:$0xff] }
  0x28   :  { %2559 = vmatpush3.bf16.msra.mxu1 %v3014_v43  ;;  %v3646_v7 = vand.u32 4294901760, %v3085_v20  ;;  %v3647_v8 = vand.u32 4294901760, %v3090_v22  ;;  %v1175_v20 = vld [vmem:[%s3629_s5 + $0x48] sm:$0xff] }
  0x29   :  { %2560 = vmatprep.subr.bf16.mxu1 %v2903_v3  ;;  %v704_v41 = vand.u32 4294901760, %v703_v33  ;;  %v2618_v33 = vpack.c.bf16 %v3080_v13, %v3078_v12  ;;  %v1174_v13 = vld [vmem:[%s3629_s5 + $0x40] sm:$0xff]  ;;  %v1217_v22 = vand.u32 4294901760, %v1175_v20 }
  0x2b   :  { %v2594_v50 = vpack.c.bf16 %v711_v42, %v704_v41 }
  0x2c   :  { %2562 = vmatpush3.bf16.msra.mxu1 %v3024_v48 }
  0x2d   :  { %2563 = vmatprep.subr.bf16.mxu1 %v2903_v3 }
  0x30   :  { %2565 = vmatpush3.bf16.msra.mxu1 %v3034_v53 }
  0x31   :  { %2566 = vmatprep.subr.bf16.mxu1 %v2903_v3 }
  0x34   :  { %2568 = vmatpush3.bf16.msra.mxu1 %v3044_v58 }
  0x35   :  { %2569 = vmatprep.subr.bf16.mxu1 %v2903_v3 }
  0x38   :  { %2571 = vmatpush3.bf16.msra.mxu1 %v3076_v11 }
  0x39   :  { %2572 = vmatprep.subr.bf16.mxu1 %v2903_v3 }
  0x3c   :  { %2574 = vmatpush3.bf16.msra.mxu1 %v3088_v21 }
  0x3d   :  { %2575 = vmatprep.subr.bf16.mxu1 %v2903_v3 }
  0xee   :  { %v496_v41 = vpop.f32.mrb[0].mxu0 }
  0xef   :  { %v2112_v42 = vpop.f32.mrb[1].mxu0 }
  0xf2   :  { %v271_v52 = vpop.f32.mrb[0].mxu1 }
  0xf3   :  { %v2839_v54 = vadd.f32 %v1846_v51, %v271_v52  ;;  %v2091_v59 = vpop.f32.mrb[1].mxu1 }
  0xf4   :  { %v3398_v59 = vsub.f32 %v1175_v20, %v1217_v22 }
  0xf5   :  { %v2840_v45 = vadd.f32 %v2839_v54, %v496_v41 }
  0xf7   :  { %2875 = vtanh.f32 %v2840_v45 }
 0x101   :  { %v2876_v44 = vpop.eup %2875 }
 0x102   :  { %v3179_v30 = vand.u32 4294901760, %v2876_v44 }
 0x104   :  { %v3182_v26 = vsub.f32 %v2876_v44, %v3179_v30 }
 0x106   :  { %v607_v5 = vand.u32 4294901760, %v3182_v26 }
 0x108   :  { %v608_v42 = vsub.f32 %v3182_v26, %v607_v5 }
 0x10a   :  { %v609_v4 = vand.u32 4294901760, %v608_v42 }
 0x10c   :  { %2146 = vmatmul.mubr.f32.vlgmr.msra.gmra.mrb[2].mxu1 %v609_v4 }
 0x10d   :  { %2577 = vmatpush3.bf16.msra.mxu1 %v3102_v29  ;;  %2180 = vmatprep.mubr.msk.f32.mxu1 %vm2904_vm0, %v2905_v6  ;;  %v1166_v29 = vld [vmem:[%s3629_s5] sm:$0xff] }
 0x10e   :  { %2578 = vmatprep.subr.bf16.mxu1 %v2903_v3 }
 0x111   :  { %2580 = vmatpush3.bf16.msra.mxu1 %v3112_v40  ;;  %v1167_v40 = vld [vmem:[%s3629_s5 + $0x8] sm:$0xff] }
 0x112   :  { %2581 = vmatprep.subr.bf16.mxu1 %v2903_v3  ;;  %v1193_v4 = vand.u32 4294901760, %v1167_v40 }
 0x115   :  { %2583 = vmatpush3.bf16.msra.mxu1 %v2582_v49  ;;  %v1168_v49 = vld [vmem:[%s3629_s5 + $0x10] sm:$0xff] }
 0x116   :  { %2584 = vmatprep.subr.bf16.mxu1 %v2903_v3 }
 0x119   :  { %2586 = vmatpush3.bf16.msra.mxu1 %v2585_v57  ;;  %v1190_v57 = vand.u32 4294901760, %v1166_v29 }
 0x11a   :  { %2587 = vmatprep.subr.bf16.mxu1 %v2903_v3 }
 0x11b   :  { %v3216_v45 = vpack.c.bf16 %v1193_v4, %v1190_v57 }
 0x11d   :  { %2589 = vmatpush3.bf16.msra.mxu1 %v2588_v14  ;;  %v1169_v14 = vld [vmem:[%s3629_s5 + $0x18] sm:$0xff]  ;;  %2697 = vmatpush3.bf16.msra.mxu0 %v3216_v45 }
 0x11e   :  { %2590 = vmatprep.subr.bf16.mxu1 %v2903_v3  ;;  %v1199_v44 = vand.u32 4294901760, %v1169_v14  ;;  %2698 = vmatprep.subr.bf16.mxu0 %v2903_v3 }
 0x120   :  { %v3224_v41 = vsub.f32 %v1169_v14, %v1199_v44 }
 0x121   :  { %2592 = vmatpush3.bf16.msra.mxu1 %v2591_v32  ;;  %v1196_v32 = vand.u32 4294901760, %v1168_v49 }
 0x122   :  { %2593 = vmatprep.subr.bf16.mxu1 %v2903_v3  ;;  %v1304_v38 = vand.u32 4294901760, %v3224_v41 }
 0x123   :  { %v3227_v51 = vpack.c.bf16 %v1199_v44, %v1196_v32 }
 0x125   :  { %2595 = vmatpush3.bf16.msra.mxu1 %v2594_v50  ;;  %v3218_v50 = vsub.f32 %v1166_v29, %v1190_v57  ;;  %2700 = vmatpush3.bf16.msra.mxu0 %v3227_v51  ;;  %v3402_v29 = vsub.f32 %v1177_v35, %v1223_v46 }
 0x126   :  { %2596 = vmatprep.subr.bf16.mxu1 %v2903_v3  ;;  %2701 = vmatprep.subr.bf16.mxu0 %v2903_v3 }
 0x127   :  { %v1283_v14 = vand.u32 4294901760, %v3218_v50 }
 0x129   :  { %2598 = vmatpush3.bf16.msra.mxu1 %v2597_v60  ;;  %v3220_v60 = vsub.f32 %v1167_v40, %v1193_v4 }
 0x12a   :  { %2599 = vmatprep.subr.bf16.mxu1 %v2903_v3 }
 0x12c   :  { %2181 = vmatmul.mubr.f32.vlgmr.msra.gmra.mrb[2].mxu1 %v3179_v30 }
 0x12d   :  { %2601 = vmatpush3.bf16.msra.mxu1 %v2600_v61  ;;  %2215 = vmatprep.mubr.msk.f32.mxu1 %vm2904_vm0, %v2905_v6  ;;  %v3222_v61 = vsub.f32 %v1168_v49, %v1196_v32  ;;  %v1290_v32 = vand.u32 4294901760, %v3220_v60 }
 0x12e   :  { %2602 = vmatprep.subr.bf16.mxu1 %v2903_v3 }
 0x131   :  { %2604 = vmatpush3.bf16.msra.mxu1 %v2603_v62  ;;  %v2648_v62 = vpack.c.bf16 %v625_v19, %v618_v18  ;;  %v2666_v18 = vpack.c.bf16 %v3645_v2, %v3644_v1  ;;  %v2669_v19 = vpack.c.bf16 %v3647_v8, %v3646_v7  ;;  %v1305_v2 = vsub.f32 %v3224_v41, %v1304_v38 }
 0x132   :  { %2605 = vmatprep.subr.bf16.mxu1 %v2903_v3 }
 0x133   :  { %v1306_v8 = vand.u32 4294901760, %v1305_v2 }
 0x135   :  { %2607 = vmatpush3.bf16.msra.mxu1 %v2606_v15  ;;  %v2651_v15 = vpack.c.bf16 %v639_v28, %v632_v27  ;;  %v1176_v28 = vld [vmem:[%s3629_s5 + $0x50] sm:$0xff] }
 0x136   :  { %2608 = vmatprep.subr.bf16.mxu1 %v2903_v3  ;;  %v1220_v39 = vand.u32 4294901760, %v1176_v28 }
 0x138   :  { %v3369_v47 = vpack.c.bf16 %v1223_v46, %v1220_v39  ;;  %v3400_v42 = vsub.f32 %v1176_v28, %v1220_v39  ;;  %v1346_v39 = vand.u32 4294901760, %v3398_v59 }
 0x139   :  { %2610 = vmatpush3.bf16.msra.mxu1 %v2609_v23  ;;  %v1180_v23 = vld [vmem:[%s3629_s5 + $0x70] sm:$0xff] }
 0x13a   :  { %2611 = vmatprep.subr.bf16.mxu1 %v2903_v3  ;;  %v1232_v57 = vand.u32 4294901760, %v1180_v23 }
 0x13d   :  { %2613 = vmatpush3.bf16.msra.mxu1 %v2612_v24  ;;  %v1181_v24 = vld [vmem:[%s3629_s5 + $0x78] sm:$0xff] }
 0x13e   :  { %2614 = vmatprep.subr.bf16.mxu1 %v2903_v3  ;;  %v1235_v4 = vand.u32 4294901760, %v1181_v24 }
 0x140   :  { %v3411_v44 = vpack.c.bf16 %v1235_v4, %v1232_v57 }
 0x141   :  { %2616 = vmatpush3.bf16.msra.mxu1 %v2615_v25 }
 0x142   :  { %2617 = vmatprep.subr.bf16.mxu1 %v2903_v3 }
 0x145   :  { %2619 = vmatpush3.bf16.msra.mxu1 %v2618_v33 }
 0x146   :  { %2620 = vmatprep.subr.bf16.mxu1 %v2903_v3 }
 0x149   :  { %2622 = vmatpush3.bf16.msra.mxu1 %v2621_v34 }
 0x14a   :  { %2623 = vmatprep.subr.bf16.mxu1 %v2903_v3 }
 0x14c   :  { %2216 = vmatmul.mubr.f32.vlgmr.msra.gmra.mrb[2].mxu1 %v3182_v26  ;;  %v1229_v26 = vand.u32 4294901760, %v1179_v56 }
 0x14d   :  { %2625 = vmatpush3.bf16.msra.mxu1 %v2986_v31  ;;  %2250 = vmatprep.mubr.msk.f32.mxu1 %vm2904_vm0, %v2905_v6 }
 0x14e   :  { %2626 = vmatprep.subr.bf16.mxu1 %v2903_v3  ;;  %v3407_v49 = vsub.f32 %v1179_v56, %v1229_v26  ;;  %v1347_v56 = vsub.f32 %v3398_v59, %v1346_v39 }
 0x151   :  { %2628 = vmatpush3.bf16.msra.mxu1 %v3000_v36 }
 0x152   :  { %2629 = vmatprep.subr.bf16.mxu1 %v2903_v3 }
 0x155   :  { %2631 = vmatpush3.bf16.msra.mxu1 %v3014_v43 }
 0x156   :  { %2632 = vmatprep.subr.bf16.mxu1 %v2903_v3 }
 0x159   :  { %2634 = vmatpush3.bf16.msra.mxu1 %v3024_v48 }
 0x15a   :  { %2635 = vmatprep.subr.bf16.mxu1 %v2903_v3 }
 0x15d   :  { %2637 = vmatpush3.bf16.msra.mxu1 %v3034_v53 }
 0x15e   :  { %2638 = vmatprep.subr.bf16.mxu1 %v2903_v3 }
 0x161   :  { %2640 = vmatpush3.bf16.msra.mxu1 %v3044_v58 }
 0x162   :  { %2641 = vmatprep.subr.bf16.mxu1 %v2903_v3 }
 0x165   :  { %2643 = vmatpush3.bf16.msra.mxu1 %v3076_v11 }
 0x166   :  { %2644 = vmatprep.subr.bf16.mxu1 %v2903_v3 }
 0x169   :  { %2646 = vmatpush3.bf16.msra.mxu1 %v3088_v21 }
 0x16a   :  { %2647 = vmatprep.subr.bf16.mxu1 %v2903_v3 }
 0x16c   :  { %2251 = vmatmul.mubr.f32.vlgmr.msra.gmra.mrb[2].mxu1 %v607_v5  ;;  %v1226_v5 = vand.u32 4294901760, %v1178_v55 }
 0x16d   :  { %2649 = vmatpush3.bf16.msra.mxu1 %v2648_v62  ;;  %2285 = vmatprep.mubr.msk.f32.mxu1 %vm2904_vm0, %v2905_v6  ;;  %v3413_v62 = vsub.f32 %v1180_v23, %v1232_v57  ;;  %v1353_v23 = vand.u32 4294901760, %v3400_v42 }
 0x16e   :  { %2650 = vmatprep.subr.bf16.mxu1 %v2903_v3  ;;  %v3405_v40 = vsub.f32 %v1178_v55, %v1226_v5 }
 0x171   :  { %2652 = vmatpush3.bf16.msra.mxu1 %v2651_v15  ;;  %v3415_v15 = vsub.f32 %v1181_v24, %v1235_v4  ;;  %v1360_v24 = vand.u32 4294901760, %v3402_v29  ;;  %v1354_v4 = vsub.f32 %v3400_v42, %v1353_v23 }
 0x172   :  { %2653 = vmatprep.subr.bf16.mxu1 %v2903_v3 }
 0x175   :  { %2655 = vmatpush3.bf16.msra.mxu1 %v2654_v16  ;;  %v1284_v16 = vsub.f32 %v3218_v50, %v1283_v14 }
 0x176   :  { %2656 = vmatprep.subr.bf16.mxu1 %v2903_v3 }
 0x177   :  { %v1285_v63 = vand.u32 4294901760, %v1284_v16  ;;  %v1361_v16 = vsub.f32 %v3402_v29, %v1360_v24 }
 0x179   :  { %2658 = vmatpush3.bf16.msra.mxu1 %v2657_v17  ;;  %v1291_v17 = vsub.f32 %v3220_v60, %v1290_v32 }
 0x17a   :  { %2659 = vmatprep.subr.bf16.mxu1 %v2903_v3 }
 0x17d   :  { %2661 = vmatpush3.bf16.msra.mxu1 %v2660_v37  ;;  %v1297_v37 = vand.u32 4294901760, %v3222_v61 }
 0x17e   :  { %2662 = vmatprep.subr.bf16.mxu1 %v2903_v3 }
 0x17f   :  { %v1298_v1 = vsub.f32 %v3222_v61, %v1297_v37 }
 0x181   :  { %2664 = vmatpush3.bf16.msra.mxu1 %v2663_v0  ;;  %v1292_v0 = vand.u32 4294901760, %v1291_v17  ;;  %v1299_v7 = vand.u32 4294901760, %v1298_v1  ;;  %v1355_v17 = vand.u32 4294901760, %v1354_v4  ;;  %v3640_v1 = vand.u32 4294901760, %v3407_v49 }
 0x182   :  { %2665 = vmatprep.subr.bf16.mxu1 %v2903_v3 }
 0x185   :  { %2667 = vmatpush3.bf16.msra.mxu1 %v2666_v18  ;;  %v3433_v18 = vpack.c.bf16 %v1292_v0, %v1285_v63  ;;  %v1362_v63 = vand.u32 4294901760, %v1361_v16  ;;  %v3641_v0 = vand.u32 4294901760, %v3405_v40 }
 0x186   :  { %2668 = vmatprep.subr.bf16.mxu1 %v2903_v3 }
 0x187   :  { %v2735_v2 = vpack.c.bf16 %v1362_v63, %v1355_v17  ;;  %v2759_v63 = vpack.c.bf16 %v3402_v29, %v3400_v42 }
 0x189   :  { %2670 = vmatpush3.bf16.msra.mxu1 %v2669_v19 }
 0x18a   :  { %2671 = vmatprep.subr.bf16.mxu1 %v2903_v3 }
 0x18c   :  { %2286 = vmatmul.mubr.f32.vlgmr.msra.gmra.mrb[2].mxu1 %v3179_v30 }
 0x18d   :  { %2673 = vmatpush3.bf16.msra.mxu1 %v2986_v31  ;;  %2320 = vmatprep.mubr.msk.f32.mxu1 %vm2904_vm0, %v2905_v6  ;;  %v1170_v31 = vld [vmem:[%s3629_s5 + $0x20] sm:$0xff] }
 0x18e   :  { %2674 = vmatprep.subr.bf16.mxu1 %v2903_v3 }
 0x191   :  { %2676 = vmatpush3.bf16.msra.mxu1 %v3000_v36  ;;  %v1171_v36 = vld [vmem:[%s3629_s5 + $0x28] sm:$0xff] }
 0x192   :  { %2677 = vmatprep.subr.bf16.mxu1 %v2903_v3 }
 0x195   :  { %2679 = vmatpush3.bf16.msra.mxu1 %v3014_v43  ;;  %v1202_v43 = vand.u32 4294901760, %v1170_v31 }
 0x196   :  { %2680 = vmatprep.subr.bf16.mxu1 %v2903_v3 }
 0x197   :  { %v3387_v25 = vsub.f32 %v1170_v31, %v1202_v43 }
 0x199   :  { %2682 = vmatpush3.bf16.msra.mxu1 %v3024_v48  ;;  %v1205_v48 = vand.u32 4294901760, %v1171_v36  ;;  %v1311_v19 = vand.u32 4294901760, %v3387_v25 }
 0x19a   :  { %2683 = vmatprep.subr.bf16.mxu1 %v2903_v3 }
 0x19b   :  { %v3389_v33 = vsub.f32 %v1171_v36, %v1205_v48  ;;  %v3437_v36 = vpack.c.bf16 %v1306_v8, %v1299_v7  ;;  %v1368_v7 = vsub.f32 %v3405_v40, %v3641_v0  ;;  %v1375_v8 = vsub.f32 %v3407_v49, %v3640_v1 }
 0x19d   :  { %2685 = vmatpush3.bf16.msra.mxu1 %v3034_v53  ;;  %v3339_v53 = vpack.c.bf16 %v1205_v48, %v1202_v43  ;;  %v1318_v31 = vand.u32 4294901760, %v3389_v33  ;;  %v1312_v43 = vsub.f32 %v3387_v25, %v1311_v19  ;;  %v2750_v4 = vpack.c.bf16 %v3389_v33, %v3387_v25 }
 0x19e   :  { %2686 = vmatprep.subr.bf16.mxu1 %v2903_v3  ;;  %v3648_v25 = vand.u32 4294901760, %v3405_v40 }
 0x19f   :  { %2703 = vmatpush3.bf16.msra.mxu0 %v3339_v53  ;;  %v1319_v48 = vsub.f32 %v3389_v33, %v1318_v31  ;;  %v3649_v33 = vand.u32 4294901760, %v3407_v49 }
 0x1a0   :  { %2704 = vmatprep.subr.bf16.mxu0 %v2903_v3 }
 0x1a1   :  { %2688 = vmatpush3.bf16.msra.mxu1 %v3044_v58  ;;  %v1172_v58 = vld [vmem:[%s3629_s5 + $0x30] sm:$0xff] }
 0x1a2   :  { %2689 = vmatprep.subr.bf16.mxu1 %v2903_v3  ;;  %v1208_v10 = vand.u32 4294901760, %v1172_v58 }
 0x1a4   :  { %v3391_v34 = vsub.f32 %v1172_v58, %v1208_v10  ;;  %v1313_v58 = vand.u32 4294901760, %v1312_v43  ;;  %v1369_v43 = vand.u32 4294901760, %v1368_v7  ;;  %v2762_v7 = vpack.c.bf16 %v3407_v49, %v3405_v40 }
 0x1a5   :  { %2691 = vmatpush3.bf16.msra.mxu1 %v3076_v11  ;;  %v1211_v11 = vand.u32 4294901760, %v1173_v9 }
 0x1a6   :  { %2692 = vmatprep.subr.bf16.mxu1 %v2903_v3 }
 0x1a7   :  { %v3349_v12 = vpack.c.bf16 %v1211_v11, %v1208_v10  ;;  %v3393_v52 = vsub.f32 %v1173_v9, %v1211_v11  ;;  %v1325_v9 = vand.u32 4294901760, %v3391_v34  ;;  %v1320_v11 = vand.u32 4294901760, %v1319_v48 }
 0x1a8   :  { %v1376_v48 = vand.u32 4294901760, %v1375_v8  ;;  %v2765_v8 = vpack.c.bf16 %v3415_v15, %v3413_v62 }
 0x1a9   :  { %2694 = vmatpush3.bf16.msra.mxu1 %v3088_v21  ;;  %2706 = vmatpush3.bf16.msra.mxu0 %v3349_v12  ;;  %v1214_v21 = vand.u32 4294901760, %v1174_v13  ;;  %v1332_v10 = vand.u32 4294901760, %v3393_v52  ;;  %v2753_v16 = vpack.c.bf16 %v3393_v52, %v3391_v34 }
 0x1aa   :  { %2707 = vmatprep.subr.bf16.mxu0 %v2903_v3 }
 0x1ab   :  { %v3359_v27 = vpack.c.bf16 %v1217_v22, %v1214_v21  ;;  %v3396_v54 = vsub.f32 %v1174_v13, %v1214_v21  ;;  %v1326_v13 = vsub.f32 %v3391_v34, %v1325_v9  ;;  %v1333_v20 = vsub.f32 %v3393_v52, %v1332_v10 }
 0x1ac   :  { %2321 = vmatmul.mubr.f32.vlgmr.msra.gmra.mrb[2].mxu1 %v3179_v30  ;;  %v3379_v30 = vpack.c.bf16 %v1229_v26, %v1226_v5  ;;  %v2726_v21 = vpack.c.bf16 %v1320_v11, %v1313_v58  ;;  %v1348_v26 = vand.u32 4294901760, %v1347_v56  ;;  %v3639_v58 = vand.u32 4294901760, %v3413_v62 }
 0x1ad   :  { %2709 = vmatpush3.bf16.msra.mxu0 %v3359_v27  ;;  %v1327_v22 = vand.u32 4294901760, %v1326_v13  ;;  %v1334_v28 = vand.u32 4294901760, %v1333_v20  ;;  %v1339_v35 = vand.u32 4294901760, %v3396_v54  ;;  %v3638_v11 = vand.u32 4294901760, %v3415_v15 }
 0x1ae   :  { %2710 = vmatprep.subr.bf16.mxu0 %v2903_v3  ;;  %v2738_v13 = vpack.c.bf16 %v1376_v48, %v1369_v43  ;;  %v1382_v20 = vsub.f32 %v3413_v62, %v3639_v58  ;;  %v2756_v17 = vpack.c.bf16 %v3398_v59, %v3396_v54  ;;  %v1847_v43 = vld [vmem:[%s3628_s4] ss:$0 sm:$0xff]  ;;  %v2810_v34 = vpack.c.bf16 %v3649_v33, %v3648_v25 }
 0x1af   :  { %v2729_v46 = vpack.c.bf16 %v1334_v28, %v1327_v22  ;;  %v1340_v55 = vsub.f32 %v3396_v54, %v1339_v35  ;;  %v1389_v22 = vsub.f32 %v3415_v15, %v3638_v11  ;;  %v3650_v52 = vand.u32 4294901760, %v3413_v62 }
 0x1b0   :  { %v1383_v28 = vand.u32 4294901760, %v1382_v20  ;;  %v3651_v54 = vand.u32 4294901760, %v3415_v15 }
 0x1b1   :  { %2712 = vmatpush3.bf16.msra.mxu0 %v3369_v47  ;;  %v1341_v5 = vand.u32 4294901760, %v1340_v55  ;;  %v1390_v55 = vand.u32 4294901760, %v1389_v22 }
 0x1b2   :  { %2713 = vmatprep.subr.bf16.mxu0 %v2903_v3  ;;  %v2813_v59 = vpack.c.bf16 %v3651_v54, %v3650_v52 }
 0x1b3   :  { %v2732_v57 = vpack.c.bf16 %v1348_v26, %v1341_v5  ;;  %v2741_v56 = vpack.c.bf16 %v1390_v55, %v1383_v28  ;;  %v2744_v5 = vpack.c.bf16 %v3220_v60, %v3218_v50  ;;  %v2747_v26 = vpack.c.bf16 %v3224_v41, %v3222_v61 }
 0x1b4   :  { %v2798_v50 = vpack.c.bf16 %v1318_v31, %v1311_v19  ;;  %v2801_v60 = vpack.c.bf16 %v1332_v10, %v1325_v9  ;;  %v2804_v61 = vpack.c.bf16 %v1346_v39, %v1339_v35  ;;  %v2807_v41 = vpack.c.bf16 %v1360_v24, %v1353_v23 }
 0x1b5   :  { %2715 = vmatpush3.bf16.msra.mxu0 %v3379_v30 }
 0x1b6   :  { %2716 = vmatprep.subr.bf16.mxu0 %v2903_v3 }
 0x1b9   :  { %2718 = vmatpush3.bf16.msra.mxu0 %v3411_v44 }
 0x1ba   :  { %2719 = vmatprep.subr.bf16.mxu0 %v2903_v3 }
 0x27f   :  { %v1161_v48 = vpop.f32.mrb[2].mxu1 }
 0x280   :  { %v2841_v20 = vadd.f32 %v1847_v43, %v1161_v48  ;;  %v2322_v22 = vpop.f32.mrb[3].mxu1 }
 0x282   :  { %2877 = vtanh.f32 %v2841_v20 }
 0x28c   :  { %v2878_v28 = vpop.eup %2877 }
 0x28d   :  { %v3504_v55 = vand.u32 4294901760, %v2878_v28 }
 0x28f   :  { %v1271_v11 = vsub.f32 %v2878_v28, %v3504_v55 }
 0x291   :  { %v1272_v58 = vand.u32 4294901760, %v1271_v11 }
 0x293   :  { %v1273_v1 = vsub.f32 %v1271_v11, %v1272_v58 }
 0x295   :  { %v1274_v0 = vand.u32 4294901760, %v1273_v1 }
 0x297   :  { %2356 = vmatmul.mubr.f32.vlgmr.msra.gmra.mrb[2].mxu0 %v1274_v0 }
 0x298   :  { %2721 = vmatpush3.bf16.msra.mxu0 %v3433_v18  ;;  %2390 = vmatprep.mubr.msk.f32.mxu0 %vm2904_vm0, %v2905_v6  ;;  %v2792_v18 = vpack.c.bf16 %v1290_v32, %v1283_v14 }
 0x299   :  { %2722 = vmatprep.subr.bf16.mxu0 %v2903_v3 }
 0x29c   :  { %2724 = vmatpush3.bf16.msra.mxu0 %v3437_v36  ;;  %v2795_v36 = vpack.c.bf16 %v1304_v38, %v1297_v37 }
 0x29d   :  { %2725 = vmatprep.subr.bf16.mxu0 %v2903_v3 }
 0x2a0   :  { %2727 = vmatpush3.bf16.msra.mxu0 %v2726_v21 }
 0x2a1   :  { %2728 = vmatprep.subr.bf16.mxu0 %v2903_v3 }
 0x2a4   :  { %2730 = vmatpush3.bf16.msra.mxu0 %v2729_v46 }
 0x2a5   :  { %2731 = vmatprep.subr.bf16.mxu0 %v2903_v3 }
 0x2a8   :  { %2733 = vmatpush3.bf16.msra.mxu0 %v2732_v57 }
 0x2a9   :  { %2734 = vmatprep.subr.bf16.mxu0 %v2903_v3 }
 0x2ac   :  { %2736 = vmatpush3.bf16.msra.mxu0 %v2735_v2 }
 0x2ad   :  { %2737 = vmatprep.subr.bf16.mxu0 %v2903_v3 }
 0x2b0   :  { %2739 = vmatpush3.bf16.msra.mxu0 %v2738_v13 }
 0x2b1   :  { %2740 = vmatprep.subr.bf16.mxu0 %v2903_v3 }
 0x2b4   :  { %2742 = vmatpush3.bf16.msra.mxu0 %v2741_v56 }
 0x2b5   :  { %2743 = vmatprep.subr.bf16.mxu0 %v2903_v3 }
 0x2b7   :  { %2391 = vmatmul.mubr.f32.vlgmr.msra.gmra.mrb[2].mxu0 %v3504_v55 }
 0x2b8   :  { %2745 = vmatpush3.bf16.msra.mxu0 %v2744_v5  ;;  %2425 = vmatprep.mubr.msk.f32.mxu0 %vm2904_vm0, %v2905_v6 }
 0x2b9   :  { %2746 = vmatprep.subr.bf16.mxu0 %v2903_v3 }
 0x2bc   :  { %2748 = vmatpush3.bf16.msra.mxu0 %v2747_v26 }
 0x2bd   :  { %2749 = vmatprep.subr.bf16.mxu0 %v2903_v3 }
 0x2c0   :  { %2751 = vmatpush3.bf16.msra.mxu0 %v2750_v4 }
 0x2c1   :  { %2752 = vmatprep.subr.bf16.mxu0 %v2903_v3 }
 0x2c4   :  { %2754 = vmatpush3.bf16.msra.mxu0 %v2753_v16 }
 0x2c5   :  { %2755 = vmatprep.subr.bf16.mxu0 %v2903_v3 }
 0x2c8   :  { %2757 = vmatpush3.bf16.msra.mxu0 %v2756_v17 }
 0x2c9   :  { %2758 = vmatprep.subr.bf16.mxu0 %v2903_v3 }
 0x2cc   :  { %2760 = vmatpush3.bf16.msra.mxu0 %v2759_v63 }
 0x2cd   :  { %2761 = vmatprep.subr.bf16.mxu0 %v2903_v3 }
 0x2d0   :  { %2763 = vmatpush3.bf16.msra.mxu0 %v2762_v7 }
 0x2d1   :  { %2764 = vmatprep.subr.bf16.mxu0 %v2903_v3 }
 0x2d4   :  { %2766 = vmatpush3.bf16.msra.mxu0 %v2765_v8 }
 0x2d5   :  { %2767 = vmatprep.subr.bf16.mxu0 %v2903_v3 }
 0x2d7   :  { %2426 = vmatmul.mubr.f32.vlgmr.msra.gmra.mrb[2].mxu0 %v1271_v11 }
 0x2d8   :  { %2769 = vmatpush3.bf16.msra.mxu0 %v3216_v45  ;;  %2460 = vmatprep.mubr.msk.f32.mxu0 %vm2904_vm0, %v2905_v6 }
 0x2d9   :  { %2770 = vmatprep.subr.bf16.mxu0 %v2903_v3 }
 0x2dc   :  { %2772 = vmatpush3.bf16.msra.mxu0 %v3227_v51 }
 0x2dd   :  { %2773 = vmatprep.subr.bf16.mxu0 %v2903_v3 }
 0x2e0   :  { %2775 = vmatpush3.bf16.msra.mxu0 %v3339_v53 }
 0x2e1   :  { %2776 = vmatprep.subr.bf16.mxu0 %v2903_v3 }
 0x2e4   :  { %2778 = vmatpush3.bf16.msra.mxu0 %v3349_v12 }
 0x2e5   :  { %2779 = vmatprep.subr.bf16.mxu0 %v2903_v3 }
 0x2e8   :  { %2781 = vmatpush3.bf16.msra.mxu0 %v3359_v27 }
 0x2e9   :  { %2782 = vmatprep.subr.bf16.mxu0 %v2903_v3 }
 0x2ec   :  { %2784 = vmatpush3.bf16.msra.mxu0 %v3369_v47 }
 0x2ed   :  { %2785 = vmatprep.subr.bf16.mxu0 %v2903_v3 }
 0x2f0   :  { %2787 = vmatpush3.bf16.msra.mxu0 %v3379_v30 }
 0x2f1   :  { %2788 = vmatprep.subr.bf16.mxu0 %v2903_v3 }
 0x2f4   :  { %2790 = vmatpush3.bf16.msra.mxu0 %v3411_v44 }
 0x2f5   :  { %2791 = vmatprep.subr.bf16.mxu0 %v2903_v3 }
 0x2f7   :  { %2461 = vmatmul.mubr.f32.vlgmr.msra.gmra.mrb[2].mxu0 %v1272_v58 }
 0x2f8   :  { %2793 = vmatpush3.bf16.msra.mxu0 %v2792_v18  ;;  %2495 = vmatprep.mubr.msk.f32.mxu0 %vm2904_vm0, %v2905_v6 }
 0x2f9   :  { %2794 = vmatprep.subr.bf16.mxu0 %v2903_v3 }
 0x2fc   :  { %2796 = vmatpush3.bf16.msra.mxu0 %v2795_v36 }
 0x2fd   :  { %2797 = vmatprep.subr.bf16.mxu0 %v2903_v3 }
 0x300   :  { %2799 = vmatpush3.bf16.msra.mxu0 %v2798_v50 }
 0x301   :  { %2800 = vmatprep.subr.bf16.mxu0 %v2903_v3 }
 0x304   :  { %2802 = vmatpush3.bf16.msra.mxu0 %v2801_v60 }
 0x305   :  { %2803 = vmatprep.subr.bf16.mxu0 %v2903_v3 }
 0x308   :  { %2805 = vmatpush3.bf16.msra.mxu0 %v2804_v61 }
 0x309   :  { %2806 = vmatprep.subr.bf16.mxu0 %v2903_v3 }
 0x30c   :  { %2808 = vmatpush3.bf16.msra.mxu0 %v2807_v41 }
 0x30d   :  { %2809 = vmatprep.subr.bf16.mxu0 %v2903_v3 }
 0x310   :  { %2811 = vmatpush3.bf16.msra.mxu0 %v2810_v34 }
 0x311   :  { %2812 = vmatprep.subr.bf16.mxu0 %v2903_v3 }
 0x314   :  { %2814 = vmatpush3.bf16.msra.mxu0 %v2813_v59 }
 0x315   :  { %2815 = vmatprep.subr.bf16.mxu0 %v2903_v3 }
 0x317   :  { %2496 = vmatmul.mubr.f32.vlgmr.msra.gmra.mrb[2].mxu0 %v3504_v55 }
 0x318   :  { %2817 = vmatpush3.bf16.msra.mxu0 %v3216_v45  ;;  %2530 = vmatprep.mubr.msk.f32.mxu0 %vm2904_vm0, %v2905_v6  ;;  %v1848_v6 = vld [vmem:[%s3630_s6] ss:$0 sm:$0xff] }
 0x319   :  { %2818 = vmatprep.subr.bf16.mxu0 %v2903_v3 }
 0x31c   :  { %2820 = vmatpush3.bf16.msra.mxu0 %v3227_v51 }
 0x31d   :  { %2821 = vmatprep.subr.bf16.mxu0 %v2903_v3 }
 0x320   :  { %2823 = vmatpush3.bf16.msra.mxu0 %v3339_v53 }
 0x321   :  { %2824 = vmatprep.subr.bf16.mxu0 %v2903_v3 }
 0x324   :  { %2826 = vmatpush3.bf16.msra.mxu0 %v3349_v12 }
 0x325   :  { %2827 = vmatprep.subr.bf16.mxu0 %v2903_v3 }
 0x328   :  { %2829 = vmatpush3.bf16.msra.mxu0 %v3359_v27 }
 0x329   :  { %2830 = vmatprep.subr.bf16.mxu0 %v2903_v3 }
 0x32c   :  { %2832 = vmatpush3.bf16.msra.mxu0 %v3369_v47 }
 0x32d   :  { %2833 = vmatprep.subr.bf16.mxu0 %v2903_v3 }
 0x330   :  { %2835 = vmatpush3.bf16.msra.mxu0 %v3379_v30 }
 0x331   :  { %2836 = vmatprep.subr.bf16.mxu0 %v2903_v3 }
 0x334   :  { %2838 = vmatpush3.bf16.msra.mxu0 %v3411_v44 }
 0x337   :  { %2531 = vmatmul.mubr.f32.vlgmr.msra.gmra.mrb[2].mxu0 %v3504_v55 }
 0x40a   :  { %v1826_v45 = vpop.f32.mrb[2].mxu0 }
 0x40b   :  { %v2842_v51 = vadd.f32 %v1848_v6, %v1826_v45  ;;  %v2532_v53 = vpop.f32.mrb[3].mxu0 }
 0x40d   :  { %1831 = vst.msk [vmem:[#allocation2] sm:$0xff] %vm1830_vm2, %v2842_v51 }
 0x40e   :  { %2890 = shalt.err (!%p2887_p4)
}
 0x40f   :  { %s2891_s24 = scalar_lea.hbm %s3631_s7, 128 }
 0x410   :  { %p2892_p5 = scmp.ne.s32.totalorder %s3631_s7, %s2891_s24  ;;  %p2895_p6 = scmp.lt.u32.totalorder %s2891_s24, %s3631_s7 }
 0x412   :  { %p2897_p7 = pnand %p2895_p6, %p2892_p5 }
 0x414   :  { %2900 = shalt.err (!%p2897_p7)
}
 0x415   :  { %1841 = dma.vmem_to_hbm [thread:$0]  %s1839_s20, 128, %s3631_s7, [#allocation3]  }
 0x416   :  { %2901 = dma.done.wait [#allocation3], 128  }
 0x417   :  { %2902 = vsyncadd [#allocation3], 4294967168 }
 0x418   :  { %1845 = vsyncpa [#allocation3], 1 }

</bundles_post_ra>
